<compile_context>
chip_gen: v7x
topology: tpu7x:2x2x1
jax: 0.10.0
libtpu: 0.0.40
codegen_flags: <defaults>
</compile_context>

<pallas_src>
import functools

import jax
import jax.numpy as jnp
from jax import lax
from jax.experimental import pallas as pl
from jax.experimental.pallas import tpu as pltpu


def _round_up(x, m):
    return ((x + m - 1) // m) * m


def _vmem_budget_bytes():
    """Returns (pipeline-buffer budget, scoped vmem limit), generation aware."""
    try:
        kind = jax.devices()[0].device_kind.lower()
    except Exception:
        kind = ""
    if "v7" in kind or "7x" in kind:
        # v7x: 64 MiB physical VMEM per core -> keep double-buffered footprint small.
        return 24 * 1024 * 1024, 32 * 1024 * 1024
    # v5e / v6e: 128 MiB physical VMEM.
    return 40 * 1024 * 1024, 64 * 1024 * 1024


def _triplet_loss_fused_kernel(ai_ref, pi_ref, ni_ref, emb_ref, out_ref, *,
                               margin, n_pad):
    """In-kernel gather via one-hot MXU matmul (small, VMEM-resident tables).

    ai/pi/ni_ref: VMEM (Bt, 1) int32 triplet index columns.
    emb_ref:      VMEM (N_pad, D_pad) embedding table (resident across grid).
    out_ref:      VMEM (Bt, 1) f32 per-row hinge losses.
    """
    emb = emb_ref[...]                                   # (N_pad, D_pad)
    bt = ai_ref.shape[0]

    def gather(idx_ref):
        idx = idx_ref[...]                               # (Bt, 1) int32
        onehot = (idx == lax.broadcasted_iota(jnp.int32, (bt, n_pad), 1)
                  ).astype(emb.dtype)                    # (Bt, N_pad)
        # Exact row select; MXU is otherwise idle so this hides under DMA.
        return jnp.dot(onehot, emb, preferred_element_type=jnp.float32)

    a = gather(ai_ref)                                   # (Bt, D_pad) f32
    p = gather(pi_ref)
    n = gather(ni_ref)
    dp = a - p
    dn = a - n
    d_pos = jnp.sqrt(jnp.sum(dp * dp, axis=-1, keepdims=True))   # (Bt, 1)
    d_neg = jnp.sqrt(jnp.sum(dn * dn, axis=-1, keepdims=True))
    out_ref[...] = jnp.maximum(d_pos - d_neg + margin, 0.0)


def _triplet_loss_streamed_kernel(a_ref, p_ref, n_ref, out_ref, *, margin):
    """Streamed path: a/p/n_ref VMEM (Bt, D_pad) in native dtype; f32 math."""
    a = a_ref[...].astype(jnp.float32)
    p = p_ref[...].astype(jnp.float32)
    n = n_ref[...].astype(jnp.float32)
    dp = a - p
    dn = a - n
    d_pos = jnp.sqrt(jnp.sum(dp * dp, axis=-1, keepdims=True))   # (Bt, 1)
    d_neg = jnp.sqrt(jnp.sum(dn * dn, axis=-1, keepdims=True))
    out_ref[...] = jnp.maximum(d_pos - d_neg + margin, 0.0)


def triplet_loss(triplets, embeddings, margin=0.2, max_block_t=None):
    """Equivalent of TripletLoss(margin).forward(triplets, embeddings) -> scalar."""
    T = int(triplets.shape[0])
    N, D = (int(s) for s in embeddings.shape)
    if T == 0:
        return jnp.float32(jnp.nan)       # torch: mean over empty -> nan

    budget, vmem_limit = _vmem_budget_bytes()
    itemsize = jnp.dtype(embeddings.dtype).itemsize
    d_pad = _round_up(D, 128)             # lane-dense blocks on every stream
    n_pad = _round_up(N, 128)
    margin = float(margin)
    t = triplets.astype(jnp.int32)

    table_bytes = n_pad * d_pad * itemsize
    fused = (n_pad <= 512) and (table_bytes <= 4 * 1024 * 1024)

    # Budget-driven block size (rows of triplets per grid step).
    if fused:
        # Resident table (x2 buffers) + gathered f32 intermediates + one-hot + indices.
        per_row = 3 * d_pad * 4 + n_pad * itemsize + 32
        bt = max(8, min((budget - 2 * table_bytes) // per_row, 8192))
    else:
        # Three double-buffered (Bt, D_pad) input streams + tiny output.
        per_row = 3 * 2 * d_pad * itemsize + 8
        bt = max(8, min(budget // per_row, 8192))
    bt = (bt // 8) * 8
    if max_block_t is not None:
        bt = max(8, min(bt, _round_up(int(max_block_t), 8)))
    bt = min(bt, _round_up(T, 8))

    t_pad = _round_up(T, bt)
    grid = (t_pad // bt,)

    out_shape = jax.ShapeDtypeStruct((t_pad, 1), jnp.float32)
    out_spec = pl.BlockSpec((bt, 1), lambda i: (i, 0))
    cparams = pltpu.CompilerParams(
        dimension_semantics=("parallel",),   # no serial accumulator -> megacore-safe
        vmem_limit_bytes=vmem_limit,
    )

    if fused:
        emb = embeddings
        if (n_pad, d_pad) != (N, D):
            emb = jnp.pad(emb, ((0, n_pad - N), (0, d_pad - D)))
        idx = t
        if t_pad != T:
            idx = jnp.pad(idx, ((0, t_pad - T), (0, 0)))   # padded rows gather row 0
        ai = idx[:, 0:1]
        pi = idx[:, 1:2]
        ni = idx[:, 2:3]
        idx_spec = pl.BlockSpec((bt, 1), lambda i: (i, 0))
        emb_spec = pl.BlockSpec((n_pad, d_pad), lambda i: (0, 0))   # VMEM-resident
        kernel = functools.partial(
            _triplet_loss_fused_kernel, margin=margin, n_pad=n_pad)
        losses = pl.pallas_call(
            kernel,
            out_shape=out_shape,
            grid=grid,
            in_specs=[idx_spec, idx_spec, idx_spec, emb_spec],
            out_specs=out_spec,
            compiler_params=cparams,
        )(ai, pi, ni, emb)
    else:
        # TODO(synk): for mid-size tables that still fit VMEM, an in-kernel
        # jnp.take / per-row DMA gather would avoid this HBM round trip too.
        a = embeddings[t[:, 0]]
        p = embeddings[t[:, 1]]
        n = embeddings[t[:, 2]]
        pad = ((0, t_pad - T), (0, d_pad - D))
        if pad != ((0, 0), (0, 0)):
            a = jnp.pad(a, pad)
            p = jnp.pad(p, pad)
            n = jnp.pad(n, pad)
        row_spec = pl.BlockSpec((bt, d_pad), lambda i: (i, 0))
        kernel = functools.partial(_triplet_loss_streamed_kernel, margin=margin)
        losses = pl.pallas_call(
            kernel,
            out_shape=out_shape,
            grid=grid,
            in_specs=[row_spec, row_spec, row_spec],
            out_specs=out_spec,
            compiler_params=cparams,
        )(a, p, n)

    # Final mean over the valid prefix (tree reduce -> better numerics than a
    # serial scalar accumulator; padded rows are simply dropped).
    return jnp.mean(losses[:T, 0])


def _reference_triplet_loss(triplets, embeddings, margin=0.2):
    tt = triplets.astype(jnp.int32)
    a = embeddings[tt[:, 0]].astype(jnp.float32)
    p = embeddings[tt[:, 1]].astype(jnp.float32)
    n = embeddings[tt[:, 2]].astype(jnp.float32)
    d_pos = jnp.sqrt(jnp.sum((a - p) ** 2, axis=1))
    d_neg = jnp.sqrt(jnp.sum((a - n) ** 2, axis=1))
    return jnp.mean(jnp.maximum(d_pos - d_neg + margin, 0.0))


if __name__ == "__main__":
    key = jax.random.PRNGKey(0)
    k1, k2, k3, k4 = jax.random.split(key, 4)

    # Case 1: small table -> fused path (VMEM-resident table, in-kernel gather).
    N, D, T = 16, 32, 8
    embeddings = jax.random.normal(k1, (N, D), dtype=jnp.float32)
    triplets = jax.random.randint(k2, (T, 3), 0, N, dtype=jnp.int32)
    loss = jax.block_until_ready(triplet_loss(triplets, embeddings, margin=0.2))
    ref = _reference_triplet_loss(triplets, embeddings, margin=0.2)
    assert jnp.allclose(loss, ref, rtol=1e-5, atol=1e-5), (loss, ref)

    # Case 2: larger table -> streamed path, multi-block grid, non-128 D padding.
    N2, D2, T2 = 2048, 40, 300
    embeddings2 = jax.random.normal(k3, (N2, D2), dtype=jnp.float32)
    triplets2 = jax.random.randint(k4, (T2, 3), 0, N2, dtype=jnp.int32)
    loss2 = jax.block_until_ready(
        triplet_loss(triplets2, embeddings2, margin=0.2, max_block_t=128))
    ref2 = _reference_triplet_loss(triplets2, embeddings2, margin=0.2)
    assert jnp.allclose(loss2, ref2, rtol=1e-5, atol=1e-5), (loss2, ref2)

    print("KERNEL_OK")
</pallas_src>

<mosaic_0001>
module attributes {stable_mosaic.version = 11 : i64} {
  func.func @_triplet_loss_fused_kernel(%arg0: i32, %arg1: memref<8x1xi32, #tpu.memory_space<vmem>>, %arg2: memref<8x1xi32, #tpu.memory_space<vmem>>, %arg3: memref<8x1xi32, #tpu.memory_space<vmem>>, %arg4: memref<128x128xf32, #tpu.memory_space<vmem>>, %arg5: memref<8x1xf32, #tpu.memory_space<vmem>>) attributes {dimension_semantics = [#tpu.dimension_semantics<parallel>], iteration_bounds = array<i64: 1>, scalar_prefetch = 0 : i64, scratch_operands = 0 : i64, tpu.core_type = #tpu.core_type<tc>, window_params = [{transform_indices = @transform_0, window_bounds = array<i64: 8, 1>}, {transform_indices = @transform_1, window_bounds = array<i64: 8, 1>}, {transform_indices = @transform_2, window_bounds = array<i64: 8, 1>}, {pipeline_mode = #tpu.pipeline_mode<synchronous>, transform_indices = @transform_3, window_bounds = array<i64: 128, 128>}, {transform_indices = @transform_4, window_bounds = array<i64: 8, 1>}]} {
    %c0 = arith.constant 0 : index
    %c0_0 = arith.constant 0 : index
    %0 = vector.load %arg4[%c0, %c0_0] : memref<128x128xf32, #tpu.memory_space<vmem>>, vector<128x128xf32>
    %c0_1 = arith.constant 0 : index
    %c0_2 = arith.constant 0 : index
    %1 = vector.load %arg1[%c0_1, %c0_2] : memref<8x1xi32, #tpu.memory_space<vmem>>, vector<8x1xi32>
    %2 = tpu.iota {dimensions = array<i32: 1>} : vector<8x128xi32>
    %3 = vector.broadcast %1 : vector<8x1xi32> to vector<8x128xi32>
    %4 = arith.cmpi eq, %3, %2 : vector<8x128xi32>
    %5 = arith.extui %4 : vector<8x128xi1> to vector<8x128xi32>
    %6 = arith.sitofp %5 : vector<8x128xi32> to vector<8x128xf32>
    %cst = arith.constant dense<0.000000e+00> : vector<8x128xf32>
    %7 = tpu.matmul %6, %0, %cst {dimension_numbers = #tpu.dot_dimension_numbers<[1], [0], [0], [1], [0, 0, 1, 1], [], []>} : vector<8x128xf32>, vector<128x128xf32>, vector<8x128xf32> -> vector<8x128xf32>
    %c0_3 = arith.constant 0 : index
    %c0_4 = arith.constant 0 : index
    %8 = vector.load %arg2[%c0_3, %c0_4] : memref<8x1xi32, #tpu.memory_space<vmem>>, vector<8x1xi32>
    %9 = tpu.iota {dimensions = array<i32: 1>} : vector<8x128xi32>
    %10 = vector.broadcast %8 : vector<8x1xi32> to vector<8x128xi32>
    %11 = arith.cmpi eq, %10, %9 : vector<8x128xi32>
    %12 = arith.extui %11 : vector<8x128xi1> to vector<8x128xi32>
    %13 = arith.sitofp %12 : vector<8x128xi32> to vector<8x128xf32>
    %cst_5 = arith.constant dense<0.000000e+00> : vector<8x128xf32>
    %14 = tpu.matmul %13, %0, %cst_5 {dimension_numbers = #tpu.dot_dimension_numbers<[1], [0], [0], [1], [0, 0, 1, 1], [], []>} : vector<8x128xf32>, vector<128x128xf32>, vector<8x128xf32> -> vector<8x128xf32>
    %c0_6 = arith.constant 0 : index
    %c0_7 = arith.constant 0 : index
    %15 = vector.load %arg3[%c0_6, %c0_7] : memref<8x1xi32, #tpu.memory_space<vmem>>, vector<8x1xi32>
    %16 = tpu.iota {dimensions = array<i32: 1>} : vector<8x128xi32>
    %17 = vector.broadcast %15 : vector<8x1xi32> to vector<8x128xi32>
    %18 = arith.cmpi eq, %17, %16 : vector<8x128xi32>
    %19 = arith.extui %18 : vector<8x128xi1> to vector<8x128xi32>
    %20 = arith.sitofp %19 : vector<8x128xi32> to vector<8x128xf32>
    %cst_8 = arith.constant dense<0.000000e+00> : vector<8x128xf32>
    %21 = tpu.matmul %20, %0, %cst_8 {dimension_numbers = #tpu.dot_dimension_numbers<[1], [0], [0], [1], [0, 0, 1, 1], [], []>} : vector<8x128xf32>, vector<128x128xf32>, vector<8x128xf32> -> vector<8x128xf32>
    %22 = arith.subf %7, %14 : vector<8x128xf32>
    %23 = arith.subf %7, %21 : vector<8x128xf32>
    %24 = arith.mulf %22, %22 : vector<8x128xf32>
    %cst_9 = arith.constant dense<0.000000e+00> : vector<8xf32>
    %25 = vector.multi_reduction <add>, %24, %cst_9 [1] : vector<8x128xf32> to vector<8xf32>
    %26 = vector.shape_cast %25 : vector<8xf32> to vector<8x1xf32>
    %27 = math.sqrt %26 : vector<8x1xf32>
    %28 = arith.mulf %23, %23 : vector<8x128xf32>
    %cst_10 = arith.constant dense<0.000000e+00> : vector<8xf32>
    %29 = vector.multi_reduction <add>, %28, %cst_10 [1] : vector<8x128xf32> to vector<8xf32>
    %30 = vector.shape_cast %29 : vector<8xf32> to vector<8x1xf32>
    %31 = math.sqrt %30 : vector<8x1xf32>
    %32 = arith.subf %27, %31 : vector<8x1xf32>
    %cst_11 = arith.constant 2.000000e-01 : f32
    %33 = vector.broadcast %cst_11 : f32 to vector<8x1xf32>
    %34 = arith.addf %32, %33 : vector<8x1xf32>
    %cst_12 = arith.constant 0.000000e+00 : f32
    %35 = vector.broadcast %cst_12 : f32 to vector<8x1xf32>
    %36 = arith.maximumf %34, %35 : vector<8x1xf32>
    %c0_13 = arith.constant 0 : index
    %c0_14 = arith.constant 0 : index
    %37 = vector.load %arg5[%c0_13, %c0_14] : memref<8x1xf32, #tpu.memory_space<vmem>>, vector<8x1xf32>
    tpu.vector_store %arg5[%c0_13, %c0_14], %36 {strides = array<i32>} : memref<8x1xf32, #tpu.memory_space<vmem>>, vector<8x1xf32>,
    return
  }
  func.func @transform_0(%arg0: i32) -> (i32, i32) {
    %c0_i32 = arith.constant 0 : i32
    %c0_i32_0 = arith.constant 0 : i32
    return %arg0, %c0_i32 : i32, i32
  }
  func.func @transform_1(%arg0: i32) -> (i32, i32) {
    %c0_i32 = arith.constant 0 : i32
    %c0_i32_0 = arith.constant 0 : i32
    return %arg0, %c0_i32 : i32, i32
  }
  func.func @transform_2(%arg0: i32) -> (i32, i32) {
    %c0_i32 = arith.constant 0 : i32
    %c0_i32_0 = arith.constant 0 : i32
    return %arg0, %c0_i32 : i32, i32
  }
  func.func @transform_3(%arg0: i32) -> (i32, i32) {
    %c0_i32 = arith.constant 0 : i32
    %c0_i32_0 = arith.constant 0 : i32
    %c0_i32_1 = arith.constant 0 : i32
    return %c0_i32, %c0_i32_0 : i32, i32
  }
  func.func @transform_4(%arg0: i32) -> (i32, i32) {
    %c0_i32 = arith.constant 0 : i32
    %c0_i32_0 = arith.constant 0 : i32
    return %arg0, %c0_i32 : i32, i32
  }
}

</mosaic_0001>

<bundles_post_ra>
// kernel: tpu_custom_call.1
= control target key start
LH: loop header
LB: loop body
LE: loop exit
PB: predicated region body
PF: predicated region fallthrough
CT: control target
= control target key end

     0   :  { %9 = vsyncpa [#allocation3], 0  ;;  %s866_s0 = inlined_call_operand.hbm [shape: s32[8,1], index: 0, kind: input, shape index: {}]   ;;  %s867_s1 = inlined_call_operand.hbm [shape: s32[8,1], index: 1, kind: input, shape index: {}]   ;;  %s868_s2 = inlined_call_operand.hbm [shape: s32[8,1], index: 2, kind: input, shape index: {}]   ;;  %s869_s3 = inlined_call_operand.hbm [shape: f32[128,128], index: 3, kind: input, shape index: {}]   ;;  %s870_s4 = inlined_call_operand.hbm [shape: f32[8,1], index: 4, kind: output, shape index: {}]  }
   0x1   :  { %10 = vsyncpa [#allocation6], 0 }
   0x2   :  { %11 = vsyncpa [#allocation9], 0 }
   0x3   :  { %12 = vsyncpa [#allocation4], 0  ;;  %s730_s15 = smov [#allocation5]   ;;  %s731_s17 = smov [#allocation2]  }
   0x4   :  { %s29_s16 = sshll.u32 %s730_s15, 4  ;;  %s19_s18 = sshll.u32 %s731_s17, 4  ;;  %s30_s16 = int_to_ptr.vmem [resolvable:$true] %s29_s16  ;;  %s20_s18 = int_to_ptr.vmem [resolvable:$true] %s19_s18 }
   0x5   :  { %s612_s21 = scalar_lea.hbm %s867_s1, 128 }
   0x6   :  { %p613_p0 = scmp.ne.s32.totalorder %s867_s1, %s612_s21  ;;  %p616_p1 = scmp.lt.u32.totalorder %s612_s21, %s867_s1 }
   0x8   :  { %p618_p2 = pnand %p616_p1, %p613_p0 }
   0xa   :  { %621 = shalt.err (!%p618_p2)
}
   0xb   :  { %s622_s26 = scalar_lea.vmem %s30_s16, 128  ;;  %p627_p4 = scmp.lt.s32.totalorder %s30_s16, %s30_s16 }
   0xc   :  { %p623_p3 = scmp.ne.s32.totalorder %s30_s16, %s622_s26  ;;  %p628_p5 = scmp.lt.s32.totalorder %s622_s26, %s622_s26 }
   0xe   :  { %p629_p6 = por %p628_p5, %p627_p4 }
  0x10   :  { %p630_p7 = pnand %p629_p6, %p623_p3 }
  0x12   :  { %633 = shalt.err (!%p630_p7)
}
  0x13   :  { %32 = dma.hbm_to_vmem [thread:$0]  %s867_s1, 128, %s30_s16, [#allocation6]  }
  0x14   :  { %s634_s5 = scalar_lea.hbm %s866_s0, 128 }
  0x15   :  { %p635_p8 = scmp.ne.s32.totalorder %s866_s0, %s634_s5  ;;  %p638_p9 = scmp.lt.u32.totalorder %s634_s5, %s866_s0 }
  0x17   :  { %p640_p10 = pnand %p638_p9, %p635_p8 }
  0x19   :  { %643 = shalt.err (!%p640_p10)
}
  0x1a   :  { %s644_s10 = scalar_lea.vmem %s20_s18, 128  ;;  %p649_p12 = scmp.lt.s32.totalorder %s20_s18, %s20_s18 }
  0x1b   :  { %p645_p11 = scmp.ne.s32.totalorder %s20_s18, %s644_s10  ;;  %p650_p13 = scmp.lt.s32.totalorder %s644_s10, %s644_s10 }
  0x1d   :  { %p651_p0 = por %p650_p13, %p649_p12 }
  0x1f   :  { %p652_p1 = pnand %p651_p0, %p645_p11 }
  0x21   :  { %655 = shalt.err (!%p652_p1)
}
  0x22   :  { %22 = dma.hbm_to_vmem [thread:$0]  %s866_s0, 128, %s20_s18, [#allocation3]  }
  0x23   :  { %s732_s12 = smov [#allocation7]   ;;  %s733_s14 = smov [#allocation8]  }
  0x24   :  { %s39_s13 = sshll.u32 %s732_s12, 4  ;;  %s48_s15 = sshll.u32 %s733_s14, 4  ;;  %s40_s13 = int_to_ptr.vmem [resolvable:$true] %s39_s13  ;;  %s791_s15 = int_to_ptr.vmem [resolvable:$true] %s48_s15 }
  0x25   :  { %s656_s19 = scalar_lea.hbm %s868_s2, 128 }
  0x26   :  { %p657_p2 = scmp.ne.s32.totalorder %s868_s2, %s656_s19  ;;  %p660_p3 = scmp.lt.u32.totalorder %s656_s19, %s868_s2 }
  0x28   :  { %p662_p4 = pnand %p660_p3, %p657_p2 }
  0x2a   :  { %665 = shalt.err (!%p662_p4)
}
  0x2b   :  { %s666_s0 = scalar_lea.vmem %s40_s13, 128  ;;  %p671_p6 = scmp.lt.s32.totalorder %s40_s13, %s40_s13 }
  0x2c   :  { %p667_p5 = scmp.ne.s32.totalorder %s40_s13, %s666_s0  ;;  %p672_p7 = scmp.lt.s32.totalorder %s666_s0, %s666_s0 }
  0x2e   :  { %p673_p8 = por %p672_p7, %p671_p6 }
  0x30   :  { %p674_p9 = pnand %p673_p8, %p667_p5 }
  0x32   :  { %677 = shalt.err (!%p674_p9)
}
  0x33   :  { %42 = dma.hbm_to_vmem [thread:$0]  %s868_s2, 128, %s40_s13, [#allocation6]  }
  0x34   :  { %s678_s27 = scalar_lea.hbm %s869_s3, 2048 }
  0x35   :  { %p679_p10 = scmp.ne.s32.totalorder %s869_s3, %s678_s27  ;;  %p682_p11 = scmp.lt.u32.totalorder %s678_s27, %s869_s3 }
  0x37   :  { %p684_p12 = pnand %p682_p11, %p679_p10 }
  0x39   :  { %687 = shalt.err (!%p684_p12)
}
  0x3a   :  { %s688_s6 = scalar_lea.vmem %s791_s15, 2048  ;;  %p693_p0 = scmp.lt.s32.totalorder %s791_s15, %s791_s15 }
  0x3b   :  { %p689_p13 = scmp.ne.s32.totalorder %s791_s15, %s688_s6  ;;  %p694_p1 = scmp.lt.s32.totalorder %s688_s6, %s688_s6 }
  0x3d   :  { %p695_p2 = por %p694_p1, %p693_p0 }
  0x3f   :  { %p696_p3 = pnand %p695_p2, %p689_p13 }
  0x41   :  { %699 = shalt.err (!%p696_p3)
}
  0x42   :  { %s734_s2 = smov 128   ;;  %s735_s7 = smov 8  }
  0x43   :  { %54 = dma.hbm_to_vmem [thread:$0]  %s869_s3, 2048, %s791_s15, [#allocation9], %s734_s2, %s734_s2, %s735_s7  }
  0x44   :  { %722 = dma.done.wait [#allocation3], 128  }
  0x45   :  { %723 = vsyncadd [#allocation3], 4294967168 }
  0x46   :  { %724 = dma.done.wait [#allocation6], 256  }
  0x47   :  { %725 = vsyncadd [#allocation6], 4294967040 }
  0x48   :  { %726 = dma.done.wait [#allocation9], 2048  }
  0x49   :  { %727 = vsyncadd [#allocation9], 4294965248  ;;  %v736_v0 = vmov 0   ;;  %v737_v1 = vmov 0.0|0.0   ;;  %v83_v2 = vld [vmem:[#allocation2] sm:$0xff]  ;;  %v239_v3 = vld [vmem:[#allocation7] sm:$0xff]  ;;  %v84_v30 = vlaneseq }
  0x4a   :  { %606 = vset.pattern.permute.xlu0 %v736_v0  ;;  %607 = vset.pattern.permute.xlu1 %v736_v0  ;;  %v67_v4 = vld [vmem:[#allocation8] sm:$0xff]  ;;  %v68_v5 = vld [vmem:[#allocation8 + $0x8] sm:$0xff]  ;;  %v69_v6 = vld [vmem:[#allocation8 + $0x10] sm:$0xff]  ;;  %vm738_vm0 = vmmov 0   ;;  %v739_v10 = vmov 0.0   ;;  %v740_v33 = vmov 1.0  }
  0x4b   :  { %522 = vmatprep.subr.bf16.mxu0 %v737_v1  ;;  %546 = vmatprep.subr.bf16.mxu1 %v737_v1  ;;  %v162_v7 = vld [vmem:[#allocation5] sm:$0xff]  ;;  %v824_v8 = vpack.c.bf16 %v68_v5, %v67_v4  ;;  %v70_v9 = vld [vmem:[#allocation8 + $0x18] sm:$0xff]  ;;  %v71_v12 = vld [vmem:[#allocation8 + $0x20] sm:$0xff]  ;;  %v85_v31 = vand.u32 127, %v84_v30  ;;  %s741_s3 = smov [#allocation10]   ;;  %vm341_vm8 = vcmask 7168  }
  0x4c   :  { %87 = vperm.xlu0 %606, %v83_v2   ;;  %241 = vperm.xlu1 %607, %v239_v3   ;;  %v526_v11 = vpack.c.bf16 %v70_v9, %v69_v6  ;;  %v72_v13 = vld [vmem:[#allocation8 + $0x28] sm:$0xff]  ;;  %v73_v15 = vld [vmem:[#allocation8 + $0x30] sm:$0xff]  ;;  %v74_v16 = vld [vmem:[#allocation8 + $0x38] sm:$0xff]  ;;  %s349_s10 = sshll.u32 %s741_s3, 4  ;;  %s350_s10 = int_to_ptr.vmem [resolvable:$true] %s349_s10 }
  0x4d   :  { %449 = vmatprep.mubr.msk.f32.mxu0 %vm738_vm0, %v739_v10  ;;  %484 = vmatprep.mubr.msk.f32.mxu1 %vm738_vm0, %v739_v10  ;;  %v529_v14 = vpack.c.bf16 %v72_v13, %v71_v12  ;;  %v532_v17 = vpack.c.bf16 %v74_v16, %v73_v15  ;;  %v75_v18 = vld [vmem:[#allocation8 + $0x40] sm:$0xff]  ;;  %v76_v19 = vld [vmem:[#allocation8 + $0x48] sm:$0xff]  ;;  %v77_v21 = vld [vmem:[#allocation8 + $0x50] sm:$0xff]  ;;  %s700_s1 = scalar_lea.vmem %s350_s10, 128  ;;  %p705_p5 = scmp.lt.s32.totalorder %s350_s10, %s350_s10 }
  0x4e   :  { %524 = vmatpush3.bf16.msra.mxu0 %v824_v8  ;;  %548 = vmatpush3.bf16.msra.mxu1 %v824_v8  ;;  %v535_v20 = vpack.c.bf16 %v76_v19, %v75_v18  ;;  %v78_v22 = vld [vmem:[#allocation8 + $0x58] sm:$0xff]  ;;  %v79_v24 = vld [vmem:[#allocation8 + $0x60] sm:$0xff]  ;;  %v80_v25 = vld [vmem:[#allocation8 + $0x68] sm:$0xff]  ;;  %p701_p4 = scmp.ne.s32.totalorder %s350_s10, %s700_s1  ;;  %p706_p6 = scmp.lt.s32.totalorder %s700_s1, %s700_s1 }
  0x4f   :  { %525 = vmatprep.subr.bf16.mxu0 %v737_v1  ;;  %549 = vmatprep.subr.bf16.mxu1 %v737_v1  ;;  %v538_v23 = vpack.c.bf16 %v78_v22, %v77_v21  ;;  %v541_v26 = vpack.c.bf16 %v80_v25, %v79_v24  ;;  %v81_v27 = vld [vmem:[#allocation8 + $0x70] sm:$0xff]  ;;  %v82_v28 = vld [vmem:[#allocation8 + $0x78] sm:$0xff] }
  0x50   :  { %164 = vperm.xlu0 %606, %v162_v7   ;;  %v544_v29 = vpack.c.bf16 %v82_v28, %v81_v27  ;;  %p707_p7 = por %p706_p6, %p705_p5 }
  0x52   :  { %527 = vmatpush3.bf16.msra.mxu0 %v526_v11  ;;  %551 = vmatpush3.bf16.msra.mxu1 %v526_v11  ;;  %p708_p8 = pnand %p707_p7, %p701_p4 }
  0x53   :  { %528 = vmatprep.subr.bf16.mxu0 %v737_v1  ;;  %552 = vmatprep.subr.bf16.mxu1 %v737_v1 }
  0x56   :  { %530 = vmatpush3.bf16.msra.mxu0 %v529_v14  ;;  %554 = vmatpush3.bf16.msra.mxu1 %v529_v14 }
  0x57   :  { %531 = vmatprep.subr.bf16.mxu0 %v737_v1  ;;  %555 = vmatprep.subr.bf16.mxu1 %v737_v1 }
  0x5a   :  { %533 = vmatpush3.bf16.msra.mxu0 %v532_v17  ;;  %557 = vmatpush3.bf16.msra.mxu1 %v532_v17 }
  0x5b   :  { %534 = vmatprep.subr.bf16.mxu0 %v737_v1  ;;  %558 = vmatprep.subr.bf16.mxu1 %v737_v1 }
  0x5e   :  { %536 = vmatpush3.bf16.msra.mxu0 %v535_v20  ;;  %560 = vmatpush3.bf16.msra.mxu1 %v535_v20 }
  0x5f   :  { %537 = vmatprep.subr.bf16.mxu0 %v737_v1  ;;  %561 = vmatprep.subr.bf16.mxu1 %v737_v1 }
  0x62   :  { %539 = vmatpush3.bf16.msra.mxu0 %v538_v23  ;;  %563 = vmatpush3.bf16.msra.mxu1 %v538_v23 }
  0x63   :  { %540 = vmatprep.subr.bf16.mxu0 %v737_v1  ;;  %564 = vmatprep.subr.bf16.mxu1 %v737_v1 }
  0x66   :  { %542 = vmatpush3.bf16.msra.mxu0 %v541_v26  ;;  %566 = vmatpush3.bf16.msra.mxu1 %v541_v26 }
  0x67   :  { %543 = vmatprep.subr.bf16.mxu0 %v737_v1  ;;  %567 = vmatprep.subr.bf16.mxu1 %v737_v1 }
  0x6a   :  { %545 = vmatpush3.bf16.msra.mxu0 %v544_v29  ;;  %569 = vmatpush3.bf16.msra.mxu1 %v544_v29 }
  0x6b   :  { %570 = vmatprep.subr.bf16.mxu0 %v737_v1 }
  0xcb   :  { %v88_v32 = vpop.permute.xlu0 %87  ;;  %v242_v35 = vpop.permute.xlu1 %241 }
  0xcc   :  { %vm89_vm1 = vcmp.eq.s32.totalorder %v88_v32, %v85_v31  ;;  %vm243_vm3 = vcmp.eq.s32.totalorder %v242_v35, %v85_v31 }
  0xcd   :  { %450 = vmatmul.mubr.msk.f32.vlgmr.msra.gmra.mrb[0].mxu0 %vm89_vm1, %v740_v33 }
  0xce   :  { %572 = vmatpush3.bf16.msra.mxu0 %v824_v8  ;;  %519 = vmatprep.mubr.msk.f32.mxu0 %vm738_vm0, %v739_v10 }
  0xcf   :  { %v165_v34 = vpop.permute.xlu0 %164  ;;  %573 = vmatprep.subr.bf16.mxu0 %v737_v1 }
  0xd0   :  { %vm166_vm2 = vcmp.eq.s32.totalorder %v165_v34, %v85_v31 }
  0xd1   :  { %485 = vmatmul.mubr.msk.f32.vlgmr.msra.gmra.mrb[0].mxu1 %vm166_vm2, %v740_v33 }
  0xd2   :  { %575 = vmatpush3.bf16.msra.mxu0 %v526_v11 }
  0xd3   :  { %576 = vmatprep.subr.bf16.mxu0 %v737_v1 }
  0xd6   :  { %578 = vmatpush3.bf16.msra.mxu0 %v529_v14 }
  0xd7   :  { %579 = vmatprep.subr.bf16.mxu0 %v737_v1 }
  0xda   :  { %581 = vmatpush3.bf16.msra.mxu0 %v532_v17 }
  0xdb   :  { %582 = vmatprep.subr.bf16.mxu0 %v737_v1 }
  0xde   :  { %584 = vmatpush3.bf16.msra.mxu0 %v535_v20 }
  0xdf   :  { %585 = vmatprep.subr.bf16.mxu0 %v737_v1 }
  0xe2   :  { %587 = vmatpush3.bf16.msra.mxu0 %v538_v23 }
  0xe3   :  { %588 = vmatprep.subr.bf16.mxu0 %v737_v1 }
  0xe6   :  { %590 = vmatpush3.bf16.msra.mxu0 %v541_v26 }
  0xe7   :  { %591 = vmatprep.subr.bf16.mxu0 %v737_v1 }
  0xea   :  { %593 = vmatpush3.bf16.msra.mxu0 %v544_v29 }
  0xed   :  { %520 = vmatmul.mubr.msk.f32.vlgmr.msra.gmra.mrb[2].mxu0 %vm243_vm3, %v740_v33 }
 0x1a0   :  { %v158_v36 = vpop.f32.mrb[0].mxu0 }
 0x1a1   :  { %v451_v37 = vpop.f32.mrb[1].mxu0 }
 0x1a4   :  { %v235_v38 = vpop.f32.mrb[0].mxu1 }
 0x1a5   :  { %v316_v39 = vsub.f32 %v158_v36, %v235_v38  ;;  %v486_v40 = vpop.f32.mrb[1].mxu1 }
 0x1a7   :  { %v318_v41 = vmul.f32 %v316_v39, %v316_v39 }
 0x1a9   :  { %319 = vadd.xlane.f32.xlu1 %v318_v41 }
 0x1c0   :  { %v312_v42 = vpop.f32.mrb[2].mxu0 }
 0x1c1   :  { %v317_v43 = vsub.f32 %v158_v36, %v312_v42  ;;  %v521_v44 = vpop.f32.mrb[3].mxu0 }
 0x1c3   :  { %v328_v45 = vmul.f32 %v317_v43, %v317_v43 }
 0x1c5   :  { %329 = vadd.xlane.f32.xlu0 %v328_v45 }
 0x236   :  { %v320_v46 = vpop.xlane.xlu1 %319 }
 0x237   :  { %608 = vrsqrt.f32 %v320_v46  ;;  %vm323_vm4 = vcmp.eq.f32.partialorder %v320_v46, inf  ;;  %v326_v53 = vand.u32 2147483648, %v320_v46  ;;  %vm325_vm6 = vcmp.eq.f32.partialorder %v320_v46, 0.0 }
 0x241   :  { %v609_v48 = vpop.eup %608 }
 0x242   :  { %v322_v49 = vmul.f32 %v609_v48, %v320_v46 }
 0x244   :  { %v324_v51 = vsel %vm323_vm4, %v320_v46, %v322_v49 }
 0x245   :  { %v327_v56 = vsel %vm325_vm6, %v326_v53, %v324_v51 }
 0x252   :  { %v330_v47 = vpop.xlane.xlu0 %329 }
 0x253   :  { %610 = vrsqrt.f32 %v330_v47  ;;  %vm333_vm5 = vcmp.eq.f32.partialorder %v330_v47, inf  ;;  %v336_v54 = vand.u32 2147483648, %v330_v47  ;;  %vm335_vm7 = vcmp.eq.f32.partialorder %v330_v47, 0.0 }
 0x25d   :  { %v611_v50 = vpop.eup %610 }
 0x25e   :  { %v332_v52 = vmul.f32 %v611_v50, %v330_v47 }
 0x260   :  { %v334_v55 = vsel %vm333_vm5, %v330_v47, %v332_v52 }
 0x261   :  { %v337_v57 = vsel %vm335_vm7, %v336_v54, %v334_v55 }
 0x262   :  { %v338_v58 = vsub.f32 %v327_v56, %v337_v57 }
 0x264   :  { %v339_v59 = vadd.f32 0.2, %v338_v58 }
 0x266   :  { %v340_v60 = vmax.f32 %v339_v59, 0.0 }
 0x268   :  { %342 = vst.msk [vmem:[#allocation10] sm:$0xff] %vm341_vm8, %v340_v60 }
 0x269   :  { %711 = shalt.err (!%p708_p8)
}
 0x26a   :  { %s712_s13 = scalar_lea.hbm %s870_s4, 128 }
 0x26b   :  { %p713_p9 = scmp.ne.s32.totalorder %s870_s4, %s712_s13  ;;  %p716_p10 = scmp.lt.u32.totalorder %s712_s13, %s870_s4 }
 0x26d   :  { %p718_p11 = pnand %p716_p10, %p713_p9 }
 0x26f   :  { %721 = shalt.err (!%p718_p11)
}
 0x270   :  { %352 = dma.vmem_to_hbm [thread:$0]  %s350_s10, 128, %s870_s4, [#allocation4]  }
 0x271   :  { %728 = dma.done.wait [#allocation4], 128  }
 0x272   :  { %729 = vsyncadd [#allocation4], 4294967168 }
 0x273   :  { %356 = vsyncpa [#allocation3], 1 }
 0x274   :  { %357 = vsyncpa [#allocation6], 1 }
 0x275   :  { %358 = vsyncpa [#allocation9], 1 }
 0x276   :  { %359 = vsyncpa [#allocation4], 1 }

</bundles_post_ra>
